<compile_context>
chip_gen: v5e
topology: v5e:2x2
jax: 0.10.0
libtpu: 0.0.40
codegen_flags: <defaults>
</compile_context>

<pallas_src>
import functools

import jax
import jax.numpy as jnp
from jax import lax
from jax.experimental import pallas as pl
from jax.experimental.pallas import tpu as pltpu


def _center_loss_kernel(x_ref, lab_ref, ct_ref, out_ref, *, num_classes):
    """One batch tile, lane axis = batch.

    x_ref  : (1, D, TB) f32 VMEM  -- features, transposed so batch -> lanes
    lab_ref: (1, 1, TB) i32 VMEM  -- class label per sample
    ct_ref : (D, C)     f32 VMEM  -- centers^T, resident across grid steps
    out_ref: (1, 1, TB) f32 VMEM  -- clamped squared distance per sample
    """
    labs = lab_ref[0]                                           # (1, TB)
    tb = labs.shape[-1]

    # One-hot^T mask: onehot_t[k, j] = (labels[j] == k).  Out-of-range labels
    # simply produce an all-zero column (no OOB access possible).
    cls = lax.broadcasted_iota(jnp.int32, (num_classes, tb), 0)
    onehot_t = (cls == labs).astype(jnp.float32)                # (C, TB)

    # Gather every sample's own center with one MXU matmul: (D,C)@(C,TB)->(D,TB).
    # HIGHEST keeps the f32 centers exact (DEFAULT would use a bf16 pass).
    g_t = jnp.dot(ct_ref[...], onehot_t,
                  preferred_element_type=jnp.float32,
                  precision=lax.Precision.HIGHEST)              # (D, TB)

    diff = x_ref[0] - g_t                                       # (D, TB)
    dist = jnp.sum(diff * diff, axis=0, keepdims=True)          # (1, TB) sublane reduce
    out_ref[0] = jnp.clip(dist, 1e-12, 1.0e12)                  # lane-dense store


def _round_up(v, m):
    return ((v + m - 1) // m) * m


def _make_center_loss_call(n_tiles, tile_b, d, c, single_buffer_centers,
                           vmem_limit):
    kernel = functools.partial(_center_loss_kernel, num_classes=c)
    if single_buffer_centers:
        # Constant block index -> double-buffering centers is pure VMEM waste.
        centers_spec = pl.BlockSpec((d, c), lambda i: (0, 0),
                                    pipeline_mode=pl.Buffered(1))
    else:
        centers_spec = pl.BlockSpec((d, c), lambda i: (0, 0))
    return pl.pallas_call(
        kernel,
        out_shape=jax.ShapeDtypeStruct((n_tiles, 1, tile_b), jnp.float32),
        grid=(n_tiles,),
        in_specs=[
            pl.BlockSpec((1, d, tile_b), lambda i: (i, 0, 0)),   # x tile (lane=batch)
            pl.BlockSpec((1, 1, tile_b), lambda i: (i, 0, 0)),   # label tile
            centers_spec,                                        # centers^T, resident
        ],
        out_specs=pl.BlockSpec((1, 1, tile_b), lambda i: (i, 0, 0)),
        compiler_params=pltpu.CompilerParams(
            dimension_semantics=("parallel",),
            vmem_limit_bytes=vmem_limit,
        ),
    )


def center_loss(x, centers, labels):
    """x: (B, D) f32, centers: (C, D) f32, labels: (B,) int -> scalar f32."""
    b, d = x.shape
    c, d2 = centers.shape
    assert d == d2, "feature dims must match"

    # Batch tiling (tile_b is the LANE dim of every block):
    #  * B >= 256 : full-lane 128-wide tiles, many grid steps.
    #  * 16<=B<256: split into 2 tiles so v7x's two TensorCores both get work.
    #  * B < 16   : a single small tile.
    if b >= 256:
        tile_b = 128
    elif b >= 16:
        tile_b = _round_up(pl.cdiv(b, 2), 8)
    else:
        tile_b = _round_up(b, 8)
    n_tiles = pl.cdiv(b, tile_b)
    b_pad = n_tiles * tile_b

    x32 = x.astype(jnp.float32)
    lab = labels.astype(jnp.int32)
    if b_pad != b:
        x32 = jnp.pad(x32, ((0, b_pad - b), (0, 0)))
        lab = jnp.pad(lab, (0, b_pad - b))

    # Layout plumbing (done once by XLA in the wrapper): batch -> lanes.
    x_tiles = x32.T.reshape(d, n_tiles, tile_b).transpose(1, 0, 2)  # (n_tiles, D, TB)
    lab_tiles = lab.reshape(n_tiles, 1, tile_b)                     # (n_tiles, 1, TB)
    centers_t = centers.astype(jnp.float32).T                       # (D, C)

    # Explicit VMEM sizing: centers (x2 unless single-buffered) + double-buffered
    # x/label/out tiles + headroom.  Matters on v5e (16 MiB default scoped limit)
    # and v7x (64 MiB physical).
    centers_bytes = d * c * 4
    tile_bytes = (d * tile_b + 2 * tile_b) * 4
    vmem_limit = int(min(max(2 * tile_bytes + 2 * centers_bytes + (8 << 20),
                             32 << 20),
                         128 << 20))
    want_single_buffer = centers_bytes > (2 << 20)

    def run(single_buffer):
        call = _make_center_loss_call(n_tiles, tile_b, d, c, single_buffer,
                                      vmem_limit)
        return call(x_tiles, lab_tiles, centers_t)

    if want_single_buffer:
        try:
            dists = run(True)
        except Exception:  # pl.Buffered(1) unsupported -> default double buffering
            dists = run(False)
    else:
        dists = run(False)

    # Tiny final reduction; padded rows are excluded here.
    per_sample = dists.reshape(-1)[:b]
    return jnp.sum(per_sample) / jnp.float32(b)


def center_loss_ref(x, centers, labels):
    """Plain-JAX reference (mirrors the PyTorch expanded-matmul forward)."""
    b = x.shape[0]
    cns = centers.shape[0]
    distmat = (
        jnp.sum(x * x, axis=1, keepdims=True)
        + jnp.sum(centers * centers, axis=1, keepdims=True).T
        - 2.0 * x @ centers.T
    )
    mask = labels[:, None] == jnp.arange(cns)[None, :]
    clamped = jnp.clip(distmat, 1e-12, 1.0e12)
    return jnp.sum(jnp.where(mask, clamped, 0.0)) / b


if __name__ == "__main__":
    # Small deterministic example consistent with the module: feat_dim=10.
    # batch=20 exercises batch padding AND a 2-step "parallel" grid.
    batch = 20
    feat_dim = 10
    num_classes = 16

    key = jax.random.PRNGKey(0)
    kx, kc, kl = jax.random.split(key, 3)

    x = jax.random.normal(kx, (batch, feat_dim), dtype=jnp.float32)
    centers = jax.random.normal(kc, (num_classes, feat_dim), dtype=jnp.float32)
    labels = jax.random.randint(kl, (batch,), 0, num_classes, dtype=jnp.int32)

    loss = center_loss(x, centers, labels)
    jax.block_until_ready(loss)

    ref = center_loss_ref(x, centers, labels)
    assert jnp.allclose(loss, ref, rtol=1e-5, atol=1e-5), (loss, ref)

    print("KERNEL_OK")
</pallas_src>

<mosaic_0001>
module attributes {stable_mosaic.version = 11 : i64} {
  func.func @_center_loss_kernel(%arg0: i32, %arg1: memref<1x10x16xf32, #tpu.memory_space<vmem>>, %arg2: memref<1x1x16xi32, #tpu.memory_space<vmem>>, %arg3: memref<10x16xf32, #tpu.memory_space<vmem>>, %arg4: memref<1x1x16xf32, #tpu.memory_space<vmem>>) attributes {dimension_semantics = [#tpu.dimension_semantics<parallel>], iteration_bounds = array<i64: 2>, scalar_prefetch = 0 : i64, scratch_operands = 0 : i64, tpu.core_type = #tpu.core_type<tc>, window_params = [{transform_indices = @transform_0, window_bounds = array<i64: 1, 10, 16>}, {transform_indices = @transform_1, window_bounds = array<i64: 1, 1, 16>}, {pipeline_mode = #tpu.pipeline_mode<synchronous>, transform_indices = @transform_2, window_bounds = array<i64: 10, 16>}, {transform_indices = @transform_3, window_bounds = array<i64: 1, 1, 16>}]} {
    %c0 = arith.constant 0 : index
    %c0_0 = arith.constant 0 : index
    %c0_1 = arith.constant 0 : index
    %0 = vector.load %arg2[%c0, %c0_0, %c0_1] : memref<1x1x16xi32, #tpu.memory_space<vmem>>, vector<1x1x16xi32>
    %1 = vector.shape_cast %0 : vector<1x1x16xi32> to vector<1x16xi32>
    %2 = tpu.iota {dimensions = array<i32: 0>} : vector<16x16xi32>
    %3 = vector.broadcast %1 : vector<1x16xi32> to vector<16x16xi32>
    %4 = arith.cmpi eq, %2, %3 : vector<16x16xi32>
    %5 = arith.extui %4 : vector<16x16xi1> to vector<16x16xi32>
    %6 = arith.sitofp %5 : vector<16x16xi32> to vector<16x16xf32>
    %c0_2 = arith.constant 0 : index
    %c0_3 = arith.constant 0 : index
    %7 = vector.load %arg3[%c0_2, %c0_3] : memref<10x16xf32, #tpu.memory_space<vmem>>, vector<10x16xf32>
    %cst = arith.constant dense<0.000000e+00> : vector<10x16xf32>
    %8 = tpu.matmul %7, %6, %cst {dimension_numbers = #tpu.dot_dimension_numbers<[1], [0], [0], [1], [0, 0, 1, 1], [], []>, precision = #tpu.contract_precision<fp32>} : vector<10x16xf32>, vector<16x16xf32>, vector<10x16xf32> -> vector<10x16xf32>
    %c0_4 = arith.constant 0 : index
    %c0_5 = arith.constant 0 : index
    %c0_6 = arith.constant 0 : index
    %9 = vector.load %arg1[%c0_4, %c0_5, %c0_6] : memref<1x10x16xf32, #tpu.memory_space<vmem>>, vector<1x10x16xf32>
    %10 = vector.shape_cast %9 : vector<1x10x16xf32> to vector<10x16xf32>
    %11 = arith.subf %10, %8 : vector<10x16xf32>
    %12 = arith.mulf %11, %11 : vector<10x16xf32>
    %cst_7 = arith.constant dense<0.000000e+00> : vector<16xf32>
    %13 = vector.multi_reduction <add>, %12, %cst_7 [0] : vector<10x16xf32> to vector<16xf32>
    %14 = vector.shape_cast %13 : vector<16xf32> to vector<1x16xf32>
    %cst_8 = arith.constant 9.99999996E-13 : f32
    %cst_9 = arith.constant 9.99999995E+11 : f32
    %15 = vector.broadcast %cst_8 : f32 to vector<1x16xf32>
    %16 = arith.maximumf %15, %14 : vector<1x16xf32>
    %17 = vector.broadcast %cst_9 : f32 to vector<1x16xf32>
    %18 = arith.minimumf %17, %16 : vector<1x16xf32>
    %c0_10 = arith.constant 0 : index
    %c0_11 = arith.constant 0 : index
    %c0_12 = arith.constant 0 : index
    %19 = vector.load %arg4[%c0_10, %c0_11, %c0_12] : memref<1x1x16xf32, #tpu.memory_space<vmem>>, vector<1x1x16xf32>
    %20 = vector.shape_cast %19 : vector<1x1x16xf32> to vector<1x16xf32>
    %21 = vector.shape_cast %18 : vector<1x16xf32> to vector<1x1x16xf32>
    tpu.vector_store %arg4[%c0_10, %c0_11, %c0_12], %21 {strides = array<i32>} : memref<1x1x16xf32, #tpu.memory_space<vmem>>, vector<1x1x16xf32>,
    return
  }
  func.func @transform_0(%arg0: i32) -> (i32, i32, i32) {
    %c0_i32 = arith.constant 0 : i32
    %c0_i32_0 = arith.constant 0 : i32
    %c0_i32_1 = arith.constant 0 : i32
    return %arg0, %c0_i32, %c0_i32_0 : i32, i32, i32
  }
  func.func @transform_1(%arg0: i32) -> (i32, i32, i32) {
    %c0_i32 = arith.constant 0 : i32
    %c0_i32_0 = arith.constant 0 : i32
    %c0_i32_1 = arith.constant 0 : i32
    return %arg0, %c0_i32, %c0_i32_0 : i32, i32, i32
  }
  func.func @transform_2(%arg0: i32) -> (i32, i32) {
    %c0_i32 = arith.constant 0 : i32
    %c0_i32_0 = arith.constant 0 : i32
    %c0_i32_1 = arith.constant 0 : i32
    return %c0_i32, %c0_i32_0 : i32, i32
  }
  func.func @transform_3(%arg0: i32) -> (i32, i32, i32) {
    %c0_i32 = arith.constant 0 : i32
    %c0_i32_0 = arith.constant 0 : i32
    %c0_i32_1 = arith.constant 0 : i32
    return %arg0, %c0_i32, %c0_i32_0 : i32, i32, i32
  }
}

</mosaic_0001>

<bundles_post_ra>
// kernel: tpu_custom_call.1
= control target key start
LH: loop header
LB: loop body
LE: loop exit
PB: predicated region body
PF: predicated region fallthrough
CT: control target
= control target key end

     0   :  { %8 = vsyncpa [#allocation3], 0  ;;  %s767_s0 = inlined_call_operand.vmem [shape: f32[2,10,16], index: 0, kind: input, shape index: {}]   ;;  %s768_s1 = inlined_call_operand.vmem [shape: s32[2,1,16], index: 1, kind: input, shape index: {}]   ;;  %s769_s2 = inlined_call_operand.vmem [shape: f32[10,16], index: 2, kind: input, shape index: {}]   ;;  %s770_s3 = inlined_call_operand.hbm [shape: f32[2,1,16], index: 3, kind: output, shape index: {}]  }
   0x1   :  { %10 = vsyncpa [#allocation3 + $0x1], 0  ;;  %s638_s12 = smov 0   ;;  %s640_s13 = smov 0  }
   0x2   :  { %s642_s14 = smov 0   ;;  %s644_s15 = smov 0  }
   0x3 LB: > { %s659_s16 = sadd.s32 4294967295, %s614_s15   ;;  %s489_s17 = sadd.s32 4294967294, %s614_s15   ;;  %s614_s15 = sphi %s644_s15, %s780_s15   ;;  %s610_s14 = sphi %s642_s14, %s779_s14   ;;  %s606_s13 = sphi %s640_s13, %s778_s13   ;;  %s602_s12 = sphi %s638_s12, %s777_s12  }
   0x4   : > { %s663_s18 = sadd.s32 1, %s614_s15   ;;  %s96_s19 = sadd.s32 1, %s610_s14 }
   0x5   : > { %s93_s20 = ssub.s32 %s614_s15, %s663_s18  ;;  %p106_p0 = scmp.ne.s32.totalorder %s610_s14, %s606_s13 }
   0x6   : > { %p94_p1 = scmp.eq.s32.totalorder %s93_s20, 0  ;;  %p107_p2 = scmp.eq.s32.totalorder %s659_s16, 1 }
   0x7   : > { %p112_p3 = scmp.ne.s32.totalorder %s606_s13, %s602_s12  ;;  %p113_p4 = scmp.eq.s32.totalorder %s489_s17, 1 }
   0x8   : > { %s674_s21 = scalar_select %p94_p1, %s610_s14, %s96_s19  }
   0x9   : > { %p676_p5 = por %p107_p2, %p106_p0  ;;  %p680_p6 = por %p113_p4, %p112_p3 }
   0xa   : > { %p492_p7 = scmp.ge.s32.totalorder %s614_s15, 1  ;;  %p148_p8 = scmp.lt.s32.totalorder %s614_s15, 3 }
   0xc   : > { %p149_p9 = pnand %p492_p7, %p148_p8 }
   0xd   : > { %p174_p10 = scmp.lt.s32.totalorder (!%p149_p9), %s659_s16, 1  ;;  %s172_s9 = sand.u32 (!%p149_p9), 1, %s606_s13  }
   0xe   : > { %152 = sbr.rel (%p149_p9) target bundleno = 218 (0xda), region = 32  ;;  %s421_s17 = scalar_lea.hbm (!%p149_p9), %s770_s3, %s659_s16 }
   0xf   : > { %s173_s19 = scalar_lea.vmem (!%p149_p9), [#allocation2], %s172_s9  ;;  %s425_s24 = sshll.u32 (!%p149_p9), %s421_s17, 4  ;;  %s426_s24 = int_to_ptr.hbm [resolvable:$true] %s425_s24 }
  0x10   : > { %s423_s20 = sshll.u32 (!%p149_p9), %s173_s19, 4  ;;  %s413_s25 = scalar_lea.sflag (!%p149_p9), [#allocation3], %s172_s9  ;;  %s424_s20 = int_to_ptr.vmem [resolvable:$true] %s423_s20 }
  0x11   : > { %s566_s26 = sshra.s32 (!%p149_p9), %s426_s24, 4  ;;  %s572_s29 = scalar_lea.hbm (!%p149_p9), %s770_s3, 2  ;;  %s567_s26 = int_to_ptr.hbm [resolvable:$true] %s566_s26 }
  0x12   : > { %s568_s27 = scalar_lea.hbm (!%p149_p9), %s567_s26, 1  ;;  %p573_p0 = scmp.lt.s32.totalorder (!%p149_p9), %s567_s26, %s770_s3 }
  0x13   : > { %v183_v0 = vlaneseq  ;;  %v194_v1 = vld [vmem:[%s769_s2 + $0x8] sm:$0x3]  ;;  %vm195_vm0 = vcmask 130048   ;;  %v193_v3 = vld [vmem:[%s769_s2] sm:$0xff]  ;;  %s695_s28 = scalar_select %p174_p10, %s659_s16, 1  ;;  %v616_v16 = vmov 1.0  }
  0x14   : > { %v200_v2 = vsel %vm195_vm0, %v194_v1, 0  ;;  %v197_v6 = vsel %vm195_vm0, %v193_v3, 0  ;;  %v617_v18 = vmov 0.0   ;;  %vm399_vm3 = vcmask 123904   ;;  %p569_p11 = scmp.ne.s32.totalorder %s567_s26, %s568_s27  ;;  %p574_p1 = scmp.lt.s32.totalorder %s572_s29, %s568_s27 }
  0x15   : > { %v184_v4 = vshrl.u32 %v183_v0, 7  ;;  %v228_v5 = vand.u32 4294901760, %v200_v2  ;;  %v220_v7 = vand.u32 4294901760, %v197_v6  ;;  %s181_s4 = scalar_lea.vmem %s768_s1, %s695_s28  ;;  %s505_s5 = sshll.u32 %s695_s28, 4  ;;  %vm410_vm4 = vcmask 122880  }
  0x16   : > { %v551_v10 = vld [vmem:[%s181_s4] ss:$0 sm:$0xff]  ;;  %s178_s8 = scalar_lea.vmem %s767_s0, %s505_s5  ;;  %p570_p12 = pnand %p569_p11, %p676_p5 }
  0x17   : > { %v185_v8 = vadd.s32 8, %v184_v4  ;;  %v229_v9 = vsub.f32 %v200_v2, %v228_v5  ;;  %v221_v11 = vsub.f32 %v197_v6, %v220_v7  ;;  %vm706_vm2 = vcmp.eq.s32.totalorder %v184_v4, %v551_v10  ;;  %v392_v48 = vld [vmem:[%s178_s8] sm:$0xff]  ;;  %v393_v55 = vld [vmem:[%s178_s8 + $0x8] sm:$0x3]  ;;  %p575_p2 = por %p574_p1, %p573_p0 }
  0x18   : > { %v495_v20 = vsel %vm706_vm2, 1.0, %v617_v18  ;;  %p571_p13 = pneg %p570_p12 }
  0x19   : > { %v230_v12 = vand.u32 4294901760, %v229_v9  ;;  %vm702_vm1 = vcmp.eq.s32.totalorder %v185_v8, %v551_v10  ;;  %v222_v15 = vand.u32 4294901760, %v221_v11  ;;  %v258_v22 = vsub.f32 %v495_v20, %v495_v20 }
  0x1a   : > { %506 = vmatpush.msk.msra.mxu2 %vm702_vm1, %v616_v16  ;;  %v496_v19 = vsel %vm702_vm1, 1.0, %v617_v18  ;;  %497 = vmatpush.msk.msra.mxu0 %vm702_vm1, %v616_v16  ;;  %p576_p3 = pnand %p575_p2, %p571_p13 }
  0x1b   : > { %v231_v17 = vsub.f32 %v229_v9, %v230_v12  ;;  %v252_v21 = vsub.f32 %v496_v19, %v496_v19  ;;  %v223_v23 = vsub.f32 %v221_v11, %v222_v15  ;;  %v259_v26 = vand.u32 4294901760, %v258_v22 }
  0x1c   : > { %507 = vmatpush.msk.msra.mxu2 %vm706_vm2, %v616_v16  ;;  %498 = vmatpush.msk.msra.mxu0 %vm706_vm2, %v616_v16 }
  0x1d   : > { %v232_v24 = vand.u32 4294901760, %v231_v17  ;;  %v253_v25 = vand.u32 4294901760, %v252_v21  ;;  %v224_v27 = vand.u32 4294901760, %v223_v23  ;;  %v260_v29 = vsub.f32 %v258_v22, %v259_v26 }
  0x1e   : > { %288 = vmatpush.msrb.mxu2 %v252_v21 }
  0x1f   : > { %233 = vmatmul.f32.vlgmr.msra.gmra.mxu2 %v232_v24  ;;  %v254_v28 = vsub.f32 %v252_v21, %v253_v25  ;;  %225 = vmatmul.f32.vlgmr.msra.gmra.mxu0 %v224_v27  ;;  %v261_v31 = vand.u32 4294901760, %v260_v29 }
  0x20   : > { %291 = vmatpush.msrb.mxu2 %v258_v22  ;;  %351 = vmatpush.msrb.mxu0 %v253_v25 }
  0x21   : > { %v255_v30 = vand.u32 4294901760, %v254_v28 }
  0x22   : > { %355 = vmatpush.msrb.mxu0 %v259_v26 }
  0x23   : > { %508 = vmatpush.msra.mxu3 %v255_v30  ;;  %256 = vmatpush.msra.mxu1 %v255_v30 }
  0x25   : > { %509 = vmatpush.msra.mxu3 %v261_v31  ;;  %262 = vmatpush.msra.mxu1 %v261_v31 }
  0x26   : > { %268 = vmatmul.f32.vlgmr.msra.gmra.mxu3 %v228_v5  ;;  %264 = vmatmul.f32.vlgmr.msra.gmra.mxu1 %v220_v7 }
  0x27   : > { %294 = vmatmul.f32.vlgmr.msrb.gmra.mxu2 %v221_v11  ;;  %499 = vmatpush.msk.msrb.mxu3 %vm702_vm1, %v616_v16 }
  0x28   : > { %501 = vmatpush.msk.msrb.mxu1 %vm702_vm1, %v616_v16  ;;  %357 = vmatmul.f32.vlgmr.msrb.gmra.mxu0 %v220_v7 }
  0x29   : > { %500 = vmatpush.msk.msrb.mxu3 %vm706_vm2, %v616_v16 }
  0x2a   : > { %502 = vmatpush.msk.msrb.mxu1 %vm706_vm2, %v616_v16 }
  0x2e   : > { %324 = vmatmul.f32.vlgmr.msrb.gmra.mxu3 %v222_v15  ;;  %384 = vmatmul.f32.vlgmr.msrb.gmra.mxu1 %v220_v7 }
  0x2f   : > { %299 = vmatmul.f32.gmra.mxu2 %v229_v9 }
  0x30   : > { %361 = vmatmul.f32.gmra.mxu0 %v228_v5 }
  0x36   : > { %330 = vmatmul.f32.gmra.mxu3 %v230_v12  ;;  %388 = vmatmul.f32.gmra.mxu1 %v228_v5 }
  0x9c   : > { %v226_v33 = vpop.f32.mrf.mxu0 }
  0xa2   : > { %v234_v32 = vpop.f32.mrf.mxu2 }
  0xa3   : > { %v265_v35 = vpop.f32.mrf.mxu1 }
  0xa4   : > { %v266_v37 = vadd.f32 %v265_v35, %v226_v33 }
  0xa5   : > { %v358_v38 = vpop.f32.mrf.mxu0 }
  0xa9   : > { %v269_v34 = vpop.f32.mrf.mxu3 }
  0xaa   : > { %v295_v36 = vpop.f32.mrf.mxu2  ;;  %v270_v45 = vadd.f32 %v269_v34, %v234_v32 }
  0xab   : > { %v296_v39 = vadd.f32 %v295_v36, %v266_v37  ;;  %v385_v41 = vpop.f32.mrf.mxu1 }
  0xad   : > { %v362_v50 = vpop.f32.mrf.mxu0 }
  0xb1   : > { %v325_v40 = vpop.f32.mrf.mxu3 }
  0xb2   : > { %v326_v42 = vadd.f32 %v325_v40, %v296_v39  ;;  %v300_v44 = vpop.f32.mrf.mxu2 }
  0xb3   : > { %v301_v46 = vadd.f32 %v300_v44, %v270_v45  ;;  %v389_v52 = vpop.f32.mrf.mxu1 }
  0xb4   : > { %v359_v43 = vadd.f32 %v358_v38, %v326_v42 }
  0xb6   : > { %v386_v47 = vadd.f32 %v385_v41, %v359_v43 }
  0xb8   : > { %v394_v53 = vsub.f32 %v392_v48, %v386_v47 }
  0xb9   : > { %v331_v49 = vpop.f32.mrf.mxu3 }
  0xba   : > { %v332_v51 = vadd.f32 %v331_v49, %v301_v46  ;;  %v396_v57 = vmul.f32 %v394_v53, %v394_v53 }
  0xbc   : > { %v363_v54 = vadd.f32 %v362_v50, %v332_v51  ;;  %v398_v60 = vsel %vm195_vm0, %v396_v57, 0.0 }
  0xbe   : > { %v390_v56 = vadd.f32 %v389_v52, %v363_v54 }
  0xc0   : > { %v395_v58 = vsub.f32 %v393_v55, %v390_v56 }
  0xc2   : > { %v397_v59 = vmul.f32 %v395_v58, %v395_v58 }
  0xc4   : > { %v400_v61 = vsel %vm399_vm3, %v397_v59, 0.0 }
  0xc5   : > { %v401_v62 = vadd.f32 %v400_v61, %v398_v60 }
  0xc7   : > { %v402_v63 = vrot.slane %v401_v62, 4 }
  0xc9   : > { %v403_v0 = vadd.f32 %v402_v63, %v401_v62 }
  0xcb   : > { %v404_v1 = vrot.slane %v403_v0, 2 }
  0xcd   : > { %v405_v2 = vadd.f32 %v404_v1, %v403_v0 }
  0xcf   : > { %v406_v3 = vrot.slane %v405_v2, 1 }
  0xd1   : > { %v407_v4 = vadd.f32 %v406_v3, %v405_v2 }
  0xd3   : > { %v408_v5 = vmax.f32 %v407_v4, 1e-12 }
  0xd5   : > { %v409_v6 = vmin.f32 %v408_v5, 1e+12 }
  0xd7   : > { %411 = vst.msk [vmem:[%s173_s19] sm:$0x1] %vm410_vm4, %v409_v6 }
  0xd8   : > { %579 = shalt.err (!%p576_p3)
}
  0xd9   : > { %510 = dma.vmem_to_hbm [thread:$0]  (%p676_p5), %s424_s20, 16, %s426_s24, %s413_s25  }
  0xda PF: > { %p516_p4 = scmp.ge.s32.totalorder %s614_s15, 2  ;;  %s437_s5 = sand.u32 1, %s602_s12  }
  0xdb   : > { %s438_s6 = scalar_lea.sflag [#allocation3], %s437_s5 }
  0xdc   : > { %p513_p7 = pnand %p516_p4, %p680_p6 }
  0xde   : > { %p514_p8 = pneg %p513_p7 }
  0xe0   : > { %597 = dma.done.wait (%p514_p8), %s438_s6, 16  }
  0xe1   : > { %599 = vsyncadd (%p514_p8), %s438_s6, 4294967280  ;;  %p13_p9 = scmp.ge.s32.totalorder %s663_s18, 4   ;;  %s777_s12 = smov %s606_s13 }
  0xe2   : > { %s778_s13 = smov %s610_s14  ;;  %s779_s14 = smov %s674_s21 }
  0xe3   : > { %s780_s15 = smov %s663_s18  ;;  %15 = sbr.rel (!%p13_p9) target bundleno = 3 (0x3), region = 70 }
  0xe8   :  { %443 = vsyncpa [#allocation3], 1 }
  0xe9   :  { %445 = vsyncpa [#allocation3 + $0x1], 1 }

</bundles_post_ra>
